<compile_context>
chip_gen: v6e
topology: v6e:2x2x1
jax: 0.10.0
libtpu: 0.0.40
codegen_flags: <defaults>
</compile_context>

<pallas_src>
import functools

import jax
import jax.numpy as jnp
from jax.experimental import pallas as pl
from jax.experimental.pallas import tpu as pltpu


# -----------------------------------------------------------------------------
# Kernel: one (batch, pixel-tile) block of the whole fused forward pass.
# All feature maps inside the kernel are (channels, pixels) matrices.
# -----------------------------------------------------------------------------
def _fused_forward_kernel(vis_ref, ir_ref,
                          wb_ref, bb_ref,
                          wav_ref, wai_ref, ba_ref,
                          wdv_ref, bdv_ref,
                          wdi_ref, bdi_ref,
                          wcv_ref, wci_ref, bc_ref,
                          out_ref):
    f32 = jnp.float32
    bf16 = jnp.bfloat16

    vis = vis_ref[0]          # (C_in, T) bf16
    ir = ir_ref[0]            # (C_in, T) bf16

    # Shared backbone: 1x1 conv (C_in -> C) + SiLU (same weights, both streams)
    wb = wb_ref[...]          # (C, C_in) bf16
    bb = bb_ref[...]          # (C, 1)    f32
    vis_f = jax.nn.silu(jnp.dot(wb, vis, preferred_element_type=f32) + bb)
    ir_f = jax.nn.silu(jnp.dot(wb, ir, preferred_element_type=f32) + bb)
    vis_b = vis_f.astype(bf16)
    ir_b = ir_f.astype(bf16)

    # FeatureAlignmentModule: conv1x1 over concat(vis, ir) -> aligned infrared
    aligned = jax.nn.silu(
        jnp.dot(wav_ref[...], vis_b, preferred_element_type=f32)
        + jnp.dot(wai_ref[...], ir_b, preferred_element_type=f32)
        + ba_ref[...])
    aligned_b = aligned.astype(bf16)

    # RegionImageQualityGuidedFusionModule: its output (fused_features) is only
    # None-checked by the PyTorch forward and never reaches the returned
    # output, so it is intentionally not computed (saves 2 matmuls + a sigmoid
    # per tile and a full-size HBM output write).

    # DualStreamAlternatingEnhancementModule: cross-gated residual enhancement
    gate_v = jax.nn.sigmoid(
        jnp.dot(wdv_ref[...], aligned_b, preferred_element_type=f32)
        + bdv_ref[...])
    enh_v = vis_f * (1.0 + gate_v)
    gate_i = jax.nn.sigmoid(
        jnp.dot(wdi_ref[...], vis_b, preferred_element_type=f32)
        + bdi_ref[...])
    enh_i = aligned * (1.0 + gate_i)

    # CrossModalFeatureInteractionModule: conv1x1 over concat(enh_v, enh_i)
    out = jax.nn.silu(
        jnp.dot(wcv_ref[...], enh_v.astype(bf16), preferred_element_type=f32)
        + jnp.dot(wci_ref[...], enh_i.astype(bf16), preferred_element_type=f32)
        + bc_ref[...])
    out_ref[0] = out.astype(out_ref.dtype)


# -----------------------------------------------------------------------------
# Parameters (deterministic synthetic weights, conv orientation (C_out, C_in)).
# Concatenated-input convs are stored pre-split into their two halves.
# -----------------------------------------------------------------------------
def init_params(c_in, c, key):
    ks = jax.random.split(key, 9)
    s = 0.2

    def w(k, shape):
        return s * jax.random.normal(k, shape, jnp.float32)

    def b():
        return jnp.zeros((c, 1), jnp.float32)

    return {
        # shared backbone
        "wb": w(ks[0], (c, c_in)), "bb": b(),
        # FeatureAlignmentModule (split halves of the concat conv)
        "wav": w(ks[1], (c, c)), "wai": w(ks[2], (c, c)), "ba": b(),
        # RegionImageQualityGuidedFusionModule (present for structural
        # fidelity; its output is dead code in the PyTorch forward, so these
        # weights are never consumed by the kernel)
        "wqv": w(ks[3], (c, c)), "wqi": w(ks[4], (c, c)), "bq": b(),
        # DualStreamAlternatingEnhancementModule
        "wdv": w(ks[5], (c, c)), "bdv": b(),
        "wdi": w(ks[6], (c, c)), "bdi": b(),
        # CrossModalFeatureInteractionModule (split halves)
        "wcv": w(ks[7], (c, c)), "wci": w(ks[8], (c, c)), "bc": b(),
    }


# -----------------------------------------------------------------------------
# Wrapper.  Inputs NCHW float; returns NCHW (N, C, H, W) in `out_dtype`.
# -----------------------------------------------------------------------------
def infrared_visible_yolov8(visible_nchw, infrared_nchw, params, *,
                            tile_p=512, out_dtype=jnp.bfloat16):
    n, c_in, h, w = visible_nchw.shape
    c = params["wb"].shape[0]
    hw = h * w

    # Pixel tile: biggest of <=tile_p that is lane-aligned; ragged tails are
    # handled by cdiv + Pallas boundary masking (no divisibility requirement).
    if tile_p >= hw:
        tile_p = hw                      # single full-extent block
    else:
        tile_p = max(128, (tile_p // 128) * 128)
    grid = (n, pl.cdiv(hw, tile_p))

    # NCHW -> (N, C_in, H*W): a free reshape, no transpose pass over HBM.
    vis = visible_nchw.reshape(n, c_in, hw).astype(jnp.bfloat16)
    ir = infrared_nchw.reshape(n, c_in, hw).astype(jnp.bfloat16)

    bf16 = jnp.bfloat16
    weight_args = [
        params["wb"].astype(bf16), params["bb"],
        params["wav"].astype(bf16), params["wai"].astype(bf16), params["ba"],
        params["wdv"].astype(bf16), params["bdv"],
        params["wdi"].astype(bf16), params["bdi"],
        params["wcv"].astype(bf16), params["wci"].astype(bf16), params["bc"],
    ]

    act_spec = pl.BlockSpec((1, c_in, tile_p), lambda b, i: (b, 0, i))
    out_spec = pl.BlockSpec((1, c, tile_p), lambda b, i: (b, 0, i))

    def const_spec(a):
        return pl.BlockSpec(a.shape, lambda b, i: (0,) * a.ndim)

    out = pl.pallas_call(
        _fused_forward_kernel,
        out_shape=jax.ShapeDtypeStruct((n, c, hw), out_dtype),
        grid_spec=pltpu.PrefetchScalarGridSpec(
            num_scalar_prefetch=0,
            grid=grid,
            in_specs=[act_spec, act_spec] + [const_spec(a) for a in weight_args],
            out_specs=out_spec,
        ),
        compiler_params=pltpu.CompilerParams(
            dimension_semantics=("parallel", "parallel")),
    )(vis, ir, *weight_args)

    # (N, C, H*W) -> NCHW: free reshape, output is already channel-major.
    return out.reshape(n, c, h, w)


# -----------------------------------------------------------------------------
# Plain-JAX reference of the same (bf16-I/O) semantics, for correctness check.
# -----------------------------------------------------------------------------
def _reference_forward(visible_nchw, infrared_nchw, params):
    n, c_in, h, w = visible_nchw.shape
    f32, bf16 = jnp.float32, jnp.bfloat16
    silu, sig = jax.nn.silu, jax.nn.sigmoid

    def conv(wk, x_bf16):  # (c_out,c_in) x (n,c_in,p) -> (n,c_out,p) in f32
        return jnp.einsum("oc,ncp->nop", params[wk].astype(bf16), x_bf16,
                          preferred_element_type=f32)

    def bias(bk):
        return params[bk][None]  # (1, c, 1)

    vis = visible_nchw.reshape(n, c_in, h * w).astype(bf16)
    ir = infrared_nchw.reshape(n, c_in, h * w).astype(bf16)

    vis_f = silu(conv("wb", vis) + bias("bb"))
    ir_f = silu(conv("wb", ir) + bias("bb"))
    aligned = silu(conv("wav", vis_f.astype(bf16))
                   + conv("wai", ir_f.astype(bf16)) + bias("ba"))
    # fused_features of RegionImageQualityGuidedFusion is dead code upstream.
    gate_v = sig(conv("wdv", aligned.astype(bf16)) + bias("bdv"))
    enh_v = vis_f * (1.0 + gate_v)
    gate_i = sig(conv("wdi", vis_f.astype(bf16)) + bias("bdi"))
    enh_i = aligned * (1.0 + gate_i)
    out = silu(conv("wcv", enh_v.astype(bf16))
               + conv("wci", enh_i.astype(bf16)) + bias("bc"))
    return out.reshape(n, -1, h, w)  # already NCHW


if __name__ == "__main__":
    # Small demo shapes: batch=2, input channels=4, spatial=16x16, feature C=32.
    N, C_IN, H, W = 2, 4, 16, 16
    C = 32

    key = jax.random.PRNGKey(0)
    k_vis, k_ir, k_par = jax.random.split(key, 3)
    visible = jax.random.normal(k_vis, (N, C_IN, H, W), jnp.float32)
    infrared = jax.random.normal(k_ir, (N, C_IN, H, W), jnp.float32)
    params = init_params(C_IN, C, k_par)

    fwd = jax.jit(functools.partial(infrared_visible_yolov8, params=params))
    out = jax.block_until_ready(fwd(visible, infrared))
    ref = jax.block_until_ready(_reference_forward(visible, infrared, params))

    assert out.shape == (N, C, H, W)
    out_f32 = out.astype(jnp.float32)
    assert jnp.allclose(out_f32, ref, atol=2e-2, rtol=2e-2), (
        "mismatch vs reference, max abs err = "
        f"{float(jnp.max(jnp.abs(out_f32 - ref)))}")
    print("KERNEL_OK")
</pallas_src>

<mosaic_0001>
module attributes {stable_mosaic.version = 11 : i64} {
  func.func @_fused_forward_kernel(%arg0: i32, %arg1: i32, %arg2: memref<1x4x256xbf16, #tpu.memory_space<vmem>>, %arg3: memref<1x4x256xbf16, #tpu.memory_space<vmem>>, %arg4: memref<32x4xbf16, #tpu.memory_space<vmem>>, %arg5: memref<32x1xf32, #tpu.memory_space<vmem>>, %arg6: memref<32x32xbf16, #tpu.memory_space<vmem>>, %arg7: memref<32x32xbf16, #tpu.memory_space<vmem>>, %arg8: memref<32x1xf32, #tpu.memory_space<vmem>>, %arg9: memref<32x32xbf16, #tpu.memory_space<vmem>>, %arg10: memref<32x1xf32, #tpu.memory_space<vmem>>, %arg11: memref<32x32xbf16, #tpu.memory_space<vmem>>, %arg12: memref<32x1xf32, #tpu.memory_space<vmem>>, %arg13: memref<32x32xbf16, #tpu.memory_space<vmem>>, %arg14: memref<32x32xbf16, #tpu.memory_space<vmem>>, %arg15: memref<32x1xf32, #tpu.memory_space<vmem>>, %arg16: memref<1x32x256xbf16, #tpu.memory_space<vmem>>) attributes {dimension_semantics = [#tpu.dimension_semantics<parallel>, #tpu.dimension_semantics<parallel>], iteration_bounds = array<i64: 2, 1>, scalar_prefetch = 0 : i64, scratch_operands = 0 : i64, tpu.core_type = #tpu.core_type<tc>, window_params = [{transform_indices = @transform_0, window_bounds = array<i64: 1, 4, 256>}, {transform_indices = @transform_1, window_bounds = array<i64: 1, 4, 256>}, {pipeline_mode = #tpu.pipeline_mode<synchronous>, transform_indices = @transform_2, window_bounds = array<i64: 32, 4>}, {pipeline_mode = #tpu.pipeline_mode<synchronous>, transform_indices = @transform_3, window_bounds = array<i64: 32, 1>}, {pipeline_mode = #tpu.pipeline_mode<synchronous>, transform_indices = @transform_4, window_bounds = array<i64: 32, 32>}, {pipeline_mode = #tpu.pipeline_mode<synchronous>, transform_indices = @transform_5, window_bounds = array<i64: 32, 32>}, {pipeline_mode = #tpu.pipeline_mode<synchronous>, transform_indices = @transform_6, window_bounds = array<i64: 32, 1>}, {pipeline_mode = #tpu.pipeline_mode<synchronous>, transform_indices = @transform_7, window_bounds = array<i64: 32, 32>}, {pipeline_mode = #tpu.pipeline_mode<synchronous>, transform_indices = @transform_8, window_bounds = array<i64: 32, 1>}, {pipeline_mode = #tpu.pipeline_mode<synchronous>, transform_indices = @transform_9, window_bounds = array<i64: 32, 32>}, {pipeline_mode = #tpu.pipeline_mode<synchronous>, transform_indices = @transform_10, window_bounds = array<i64: 32, 1>}, {pipeline_mode = #tpu.pipeline_mode<synchronous>, transform_indices = @transform_11, window_bounds = array<i64: 32, 32>}, {pipeline_mode = #tpu.pipeline_mode<synchronous>, transform_indices = @transform_12, window_bounds = array<i64: 32, 32>}, {pipeline_mode = #tpu.pipeline_mode<synchronous>, transform_indices = @transform_13, window_bounds = array<i64: 32, 1>}, {transform_indices = @transform_14, window_bounds = array<i64: 1, 32, 256>}]} {
    %c0 = arith.constant 0 : index
    %c0_0 = arith.constant 0 : index
    %c0_1 = arith.constant 0 : index
    %0 = vector.load %arg2[%c0, %c0_0, %c0_1] : memref<1x4x256xbf16, #tpu.memory_space<vmem>>, vector<1x4x256xbf16>
    %1 = vector.shape_cast %0 : vector<1x4x256xbf16> to vector<4x256xbf16>
    %c0_2 = arith.constant 0 : index
    %c0_3 = arith.constant 0 : index
    %c0_4 = arith.constant 0 : index
    %2 = vector.load %arg3[%c0_2, %c0_3, %c0_4] : memref<1x4x256xbf16, #tpu.memory_space<vmem>>, vector<1x4x256xbf16>
    %3 = vector.shape_cast %2 : vector<1x4x256xbf16> to vector<4x256xbf16>
    %c0_5 = arith.constant 0 : index
    %c0_6 = arith.constant 0 : index
    %4 = vector.load %arg4[%c0_5, %c0_6] : memref<32x4xbf16, #tpu.memory_space<vmem>>, vector<32x4xbf16>
    %c0_7 = arith.constant 0 : index
    %c0_8 = arith.constant 0 : index
    %5 = vector.load %arg5[%c0_7, %c0_8] : memref<32x1xf32, #tpu.memory_space<vmem>>, vector<32x1xf32>
    %cst = arith.constant dense<0.000000e+00> : vector<32x256xf32>
    %6 = tpu.matmul %4, %1, %cst {dimension_numbers = #tpu.dot_dimension_numbers<[1], [0], [0], [1], [0, 0, 1, 1], [], []>} : vector<32x4xbf16>, vector<4x256xbf16>, vector<32x256xf32> -> vector<32x256xf32>
    %7 = vector.broadcast %5 : vector<32x1xf32> to vector<32x256xf32>
    %8 = arith.addf %6, %7 : vector<32x256xf32>
    %9 = arith.negf %8 : vector<32x256xf32>
    %10 = math.exp %9 : vector<32x256xf32>
    %cst_9 = arith.constant 1.000000e+00 : f32
    %11 = vector.broadcast %cst_9 : f32 to vector<32x256xf32>
    %12 = arith.addf %11, %10 : vector<32x256xf32>
    %13 = arith.divf %11, %12 : vector<32x256xf32>
    %14 = arith.mulf %8, %13 : vector<32x256xf32>
    %cst_10 = arith.constant dense<0.000000e+00> : vector<32x256xf32>
    %15 = tpu.matmul %4, %3, %cst_10 {dimension_numbers = #tpu.dot_dimension_numbers<[1], [0], [0], [1], [0, 0, 1, 1], [], []>} : vector<32x4xbf16>, vector<4x256xbf16>, vector<32x256xf32> -> vector<32x256xf32>
    %16 = vector.broadcast %5 : vector<32x1xf32> to vector<32x256xf32>
    %17 = arith.addf %15, %16 : vector<32x256xf32>
    %18 = arith.negf %17 : vector<32x256xf32>
    %19 = math.exp %18 : vector<32x256xf32>
    %cst_11 = arith.constant 1.000000e+00 : f32
    %20 = vector.broadcast %cst_11 : f32 to vector<32x256xf32>
    %21 = arith.addf %20, %19 : vector<32x256xf32>
    %22 = arith.divf %20, %21 : vector<32x256xf32>
    %23 = arith.mulf %17, %22 : vector<32x256xf32>
    %24 = arith.truncf %14 : vector<32x256xf32> to vector<32x256xbf16>
    %25 = arith.truncf %23 : vector<32x256xf32> to vector<32x256xbf16>
    %c0_12 = arith.constant 0 : index
    %c0_13 = arith.constant 0 : index
    %26 = vector.load %arg6[%c0_12, %c0_13] : memref<32x32xbf16, #tpu.memory_space<vmem>>, vector<32x32xbf16>
    %cst_14 = arith.constant dense<0.000000e+00> : vector<32x256xf32>
    %27 = tpu.matmul %26, %24, %cst_14 {dimension_numbers = #tpu.dot_dimension_numbers<[1], [0], [0], [1], [0, 0, 1, 1], [], []>} : vector<32x32xbf16>, vector<32x256xbf16>, vector<32x256xf32> -> vector<32x256xf32>
    %c0_15 = arith.constant 0 : index
    %c0_16 = arith.constant 0 : index
    %28 = vector.load %arg7[%c0_15, %c0_16] : memref<32x32xbf16, #tpu.memory_space<vmem>>, vector<32x32xbf16>
    %cst_17 = arith.constant dense<0.000000e+00> : vector<32x256xf32>
    %29 = tpu.matmul %28, %25, %cst_17 {dimension_numbers = #tpu.dot_dimension_numbers<[1], [0], [0], [1], [0, 0, 1, 1], [], []>} : vector<32x32xbf16>, vector<32x256xbf16>, vector<32x256xf32> -> vector<32x256xf32>
    %30 = arith.addf %27, %29 : vector<32x256xf32>
    %c0_18 = arith.constant 0 : index
    %c0_19 = arith.constant 0 : index
    %31 = vector.load %arg8[%c0_18, %c0_19] : memref<32x1xf32, #tpu.memory_space<vmem>>, vector<32x1xf32>
    %32 = vector.broadcast %31 : vector<32x1xf32> to vector<32x256xf32>
    %33 = arith.addf %30, %32 : vector<32x256xf32>
    %34 = arith.negf %33 : vector<32x256xf32>
    %35 = math.exp %34 : vector<32x256xf32>
    %cst_20 = arith.constant 1.000000e+00 : f32
    %36 = vector.broadcast %cst_20 : f32 to vector<32x256xf32>
    %37 = arith.addf %36, %35 : vector<32x256xf32>
    %38 = arith.divf %36, %37 : vector<32x256xf32>
    %39 = arith.mulf %33, %38 : vector<32x256xf32>
    %40 = arith.truncf %39 : vector<32x256xf32> to vector<32x256xbf16>
    %c0_21 = arith.constant 0 : index
    %c0_22 = arith.constant 0 : index
    %41 = vector.load %arg9[%c0_21, %c0_22] : memref<32x32xbf16, #tpu.memory_space<vmem>>, vector<32x32xbf16>
    %cst_23 = arith.constant dense<0.000000e+00> : vector<32x256xf32>
    %42 = tpu.matmul %41, %40, %cst_23 {dimension_numbers = #tpu.dot_dimension_numbers<[1], [0], [0], [1], [0, 0, 1, 1], [], []>} : vector<32x32xbf16>, vector<32x256xbf16>, vector<32x256xf32> -> vector<32x256xf32>
    %c0_24 = arith.constant 0 : index
    %c0_25 = arith.constant 0 : index
    %43 = vector.load %arg10[%c0_24, %c0_25] : memref<32x1xf32, #tpu.memory_space<vmem>>, vector<32x1xf32>
    %44 = vector.broadcast %43 : vector<32x1xf32> to vector<32x256xf32>
    %45 = arith.addf %42, %44 : vector<32x256xf32>
    %46 = arith.negf %45 : vector<32x256xf32>
    %47 = math.exp %46 : vector<32x256xf32>
    %cst_26 = arith.constant 1.000000e+00 : f32
    %48 = vector.broadcast %cst_26 : f32 to vector<32x256xf32>
    %49 = arith.addf %48, %47 : vector<32x256xf32>
    %50 = arith.divf %48, %49 : vector<32x256xf32>
    %cst_27 = arith.constant 1.000000e+00 : f32
    %51 = vector.broadcast %cst_27 : f32 to vector<32x256xf32>
    %52 = arith.addf %51, %50 : vector<32x256xf32>
    %53 = arith.mulf %14, %52 : vector<32x256xf32>
    %c0_28 = arith.constant 0 : index
    %c0_29 = arith.constant 0 : index
    %54 = vector.load %arg11[%c0_28, %c0_29] : memref<32x32xbf16, #tpu.memory_space<vmem>>, vector<32x32xbf16>
    %cst_30 = arith.constant dense<0.000000e+00> : vector<32x256xf32>
    %55 = tpu.matmul %54, %24, %cst_30 {dimension_numbers = #tpu.dot_dimension_numbers<[1], [0], [0], [1], [0, 0, 1, 1], [], []>} : vector<32x32xbf16>, vector<32x256xbf16>, vector<32x256xf32> -> vector<32x256xf32>
    %c0_31 = arith.constant 0 : index
    %c0_32 = arith.constant 0 : index
    %56 = vector.load %arg12[%c0_31, %c0_32] : memref<32x1xf32, #tpu.memory_space<vmem>>, vector<32x1xf32>
    %57 = vector.broadcast %56 : vector<32x1xf32> to vector<32x256xf32>
    %58 = arith.addf %55, %57 : vector<32x256xf32>
    %59 = arith.negf %58 : vector<32x256xf32>
    %60 = math.exp %59 : vector<32x256xf32>
    %cst_33 = arith.constant 1.000000e+00 : f32
    %61 = vector.broadcast %cst_33 : f32 to vector<32x256xf32>
    %62 = arith.addf %61, %60 : vector<32x256xf32>
    %63 = arith.divf %61, %62 : vector<32x256xf32>
    %cst_34 = arith.constant 1.000000e+00 : f32
    %64 = vector.broadcast %cst_34 : f32 to vector<32x256xf32>
    %65 = arith.addf %64, %63 : vector<32x256xf32>
    %66 = arith.mulf %39, %65 : vector<32x256xf32>
    %c0_35 = arith.constant 0 : index
    %c0_36 = arith.constant 0 : index
    %67 = vector.load %arg13[%c0_35, %c0_36] : memref<32x32xbf16, #tpu.memory_space<vmem>>, vector<32x32xbf16>
    %68 = arith.truncf %53 : vector<32x256xf32> to vector<32x256xbf16>
    %cst_37 = arith.constant dense<0.000000e+00> : vector<32x256xf32>
    %69 = tpu.matmul %67, %68, %cst_37 {dimension_numbers = #tpu.dot_dimension_numbers<[1], [0], [0], [1], [0, 0, 1, 1], [], []>} : vector<32x32xbf16>, vector<32x256xbf16>, vector<32x256xf32> -> vector<32x256xf32>
    %c0_38 = arith.constant 0 : index
    %c0_39 = arith.constant 0 : index
    %70 = vector.load %arg14[%c0_38, %c0_39] : memref<32x32xbf16, #tpu.memory_space<vmem>>, vector<32x32xbf16>
    %71 = arith.truncf %66 : vector<32x256xf32> to vector<32x256xbf16>
    %cst_40 = arith.constant dense<0.000000e+00> : vector<32x256xf32>
    %72 = tpu.matmul %70, %71, %cst_40 {dimension_numbers = #tpu.dot_dimension_numbers<[1], [0], [0], [1], [0, 0, 1, 1], [], []>} : vector<32x32xbf16>, vector<32x256xbf16>, vector<32x256xf32> -> vector<32x256xf32>
    %73 = arith.addf %69, %72 : vector<32x256xf32>
    %c0_41 = arith.constant 0 : index
    %c0_42 = arith.constant 0 : index
    %74 = vector.load %arg15[%c0_41, %c0_42] : memref<32x1xf32, #tpu.memory_space<vmem>>, vector<32x1xf32>
    %75 = vector.broadcast %74 : vector<32x1xf32> to vector<32x256xf32>
    %76 = arith.addf %73, %75 : vector<32x256xf32>
    %77 = arith.negf %76 : vector<32x256xf32>
    %78 = math.exp %77 : vector<32x256xf32>
    %cst_43 = arith.constant 1.000000e+00 : f32
    %79 = vector.broadcast %cst_43 : f32 to vector<32x256xf32>
    %80 = arith.addf %79, %78 : vector<32x256xf32>
    %81 = arith.divf %79, %80 : vector<32x256xf32>
    %82 = arith.mulf %76, %81 : vector<32x256xf32>
    %83 = arith.truncf %82 : vector<32x256xf32> to vector<32x256xbf16>
    %c0_44 = arith.constant 0 : index
    %c0_45 = arith.constant 0 : index
    %c0_46 = arith.constant 0 : index
    %84 = vector.load %arg16[%c0_44, %c0_45, %c0_46] : memref<1x32x256xbf16, #tpu.memory_space<vmem>>, vector<1x32x256xbf16>
    %85 = vector.shape_cast %84 : vector<1x32x256xbf16> to vector<32x256xbf16>
    %86 = vector.shape_cast %83 : vector<32x256xbf16> to vector<1x32x256xbf16>
    tpu.vector_store %arg16[%c0_44, %c0_45, %c0_46], %86 {strides = array<i32>} : memref<1x32x256xbf16, #tpu.memory_space<vmem>>, vector<1x32x256xbf16>,
    return
  }
  func.func @transform_0(%arg0: i32, %arg1: i32) -> (i32, i32, i32) {
    %c0_i32 = arith.constant 0 : i32
    %c0_i32_0 = arith.constant 0 : i32
    return %arg0, %c0_i32, %arg1 : i32, i32, i32
  }
  func.func @transform_1(%arg0: i32, %arg1: i32) -> (i32, i32, i32) {
    %c0_i32 = arith.constant 0 : i32
    %c0_i32_0 = arith.constant 0 : i32
    return %arg0, %c0_i32, %arg1 : i32, i32, i32
  }
  func.func @transform_2(%arg0: i32, %arg1: i32) -> (i32, i32) {
    %c0_i32 = arith.constant 0 : i32
    %c0_i32_0 = arith.constant 0 : i32
    %c0_i32_1 = arith.constant 0 : i32
    return %c0_i32, %c0_i32_0 : i32, i32
  }
  func.func @transform_3(%arg0: i32, %arg1: i32) -> (i32, i32) {
    %c0_i32 = arith.constant 0 : i32
    %c0_i32_0 = arith.constant 0 : i32
    %c0_i32_1 = arith.constant 0 : i32
    return %c0_i32, %c0_i32_0 : i32, i32
  }
  func.func @transform_4(%arg0: i32, %arg1: i32) -> (i32, i32) {
    %c0_i32 = arith.constant 0 : i32
    %c0_i32_0 = arith.constant 0 : i32
    %c0_i32_1 = arith.constant 0 : i32
    return %c0_i32, %c0_i32_0 : i32, i32
  }
  func.func @transform_5(%arg0: i32, %arg1: i32) -> (i32, i32) {
    %c0_i32 = arith.constant 0 : i32
    %c0_i32_0 = arith.constant 0 : i32
    %c0_i32_1 = arith.constant 0 : i32
    return %c0_i32, %c0_i32_0 : i32, i32
  }
  func.func @transform_6(%arg0: i32, %arg1: i32) -> (i32, i32) {
    %c0_i32 = arith.constant 0 : i32
    %c0_i32_0 = arith.constant 0 : i32
    %c0_i32_1 = arith.constant 0 : i32
    return %c0_i32, %c0_i32_0 : i32, i32
  }
  func.func @transform_7(%arg0: i32, %arg1: i32) -> (i32, i32) {
    %c0_i32 = arith.constant 0 : i32
    %c0_i32_0 = arith.constant 0 : i32
    %c0_i32_1 = arith.constant 0 : i32
    return %c0_i32, %c0_i32_0 : i32, i32
  }
  func.func @transform_8(%arg0: i32, %arg1: i32) -> (i32, i32) {
    %c0_i32 = arith.constant 0 : i32
    %c0_i32_0 = arith.constant 0 : i32
    %c0_i32_1 = arith.constant 0 : i32
    return %c0_i32, %c0_i32_0 : i32, i32
  }
  func.func @transform_9(%arg0: i32, %arg1: i32) -> (i32, i32) {
    %c0_i32 = arith.constant 0 : i32
    %c0_i32_0 = arith.constant 0 : i32
    %c0_i32_1 = arith.constant 0 : i32
    return %c0_i32, %c0_i32_0 : i32, i32
  }
  func.func @transform_10(%arg0: i32, %arg1: i32) -> (i32, i32) {
    %c0_i32 = arith.constant 0 : i32
    %c0_i32_0 = arith.constant 0 : i32
    %c0_i32_1 = arith.constant 0 : i32
    return %c0_i32, %c0_i32_0 : i32, i32
  }
  func.func @transform_11(%arg0: i32, %arg1: i32) -> (i32, i32) {
    %c0_i32 = arith.constant 0 : i32
    %c0_i32_0 = arith.constant 0 : i32
    %c0_i32_1 = arith.constant 0 : i32
    return %c0_i32, %c0_i32_0 : i32, i32
  }
  func.func @transform_12(%arg0: i32, %arg1: i32) -> (i32, i32) {
    %c0_i32 = arith.constant 0 : i32
    %c0_i32_0 = arith.constant 0 : i32
    %c0_i32_1 = arith.constant 0 : i32
    return %c0_i32, %c0_i32_0 : i32, i32
  }
  func.func @transform_13(%arg0: i32, %arg1: i32) -> (i32, i32) {
    %c0_i32 = arith.constant 0 : i32
    %c0_i32_0 = arith.constant 0 : i32
    %c0_i32_1 = arith.constant 0 : i32
    return %c0_i32, %c0_i32_0 : i32, i32
  }
  func.func @transform_14(%arg0: i32, %arg1: i32) -> (i32, i32, i32) {
    %c0_i32 = arith.constant 0 : i32
    %c0_i32_0 = arith.constant 0 : i32
    return %arg0, %c0_i32, %arg1 : i32, i32, i32
  }
}

</mosaic_0001>

<bundles_post_ra>
// kernel: infrared_visible_yolov8.1
= control target key start
LH: loop header
LB: loop body
LE: loop exit
PB: predicated region body
PF: predicated region fallthrough
CT: control target
= control target key end

     0   :  { %s2223_s29 = smov 0   ;;  %s2225_s30 = smov 0   ;;  %s2567_s0 = inlined_call_operand.vmem [shape: bf16[2,4,256], index: 0, kind: input, shape index: {}]   ;;  %s2568_s1 = inlined_call_operand.vmem [shape: bf16[2,4,256], index: 1, kind: input, shape index: {}]   ;;  %s2569_s2 = inlined_call_operand.vmem [shape: bf16[32,4], index: 2, kind: input, shape index: {}]   ;;  %s2570_s3 = inlined_call_operand.vmem [shape: f32[32,1], index: 3, kind: input, shape index: {}, may-alias: {3,6,8,10,13}]   ;;  %s2571_s4 = inlined_call_operand.vmem [shape: bf16[32,32], index: 4, kind: input, shape index: {}]   ;;  %s2572_s5 = inlined_call_operand.vmem [shape: bf16[32,32], index: 5, kind: input, shape index: {}]   ;;  %s2573_s6 = inlined_call_operand.vmem [shape: f32[32,1], index: 6, kind: input, shape index: {}, may-alias: {3,6,8,10,13}]   ;;  %s2574_s7 = inlined_call_operand.vmem [shape: bf16[32,32], index: 7, kind: input, shape index: {}]   ;;  %s2575_s8 = inlined_call_operand.vmem [shape: f32[32,1], index: 8, kind: input, shape index: {}, may-alias: {3,6,8,10,13}]   ;;  %s2576_s9 = inlined_call_operand.vmem [shape: bf16[32,32], index: 9, kind: input, shape index: {}]   ;;  %s2577_s10 = inlined_call_operand.vmem [shape: f32[32,1], index: 10, kind: input, shape index: {}, may-alias: {3,6,8,10,13}]   ;;  %s2578_s11 = inlined_call_operand.vmem [shape: bf16[32,32], index: 11, kind: input, shape index: {}]   ;;  %s2579_s12 = inlined_call_operand.vmem [shape: bf16[32,32], index: 12, kind: input, shape index: {}]   ;;  %s2580_s13 = inlined_call_operand.vmem [shape: f32[32,1], index: 13, kind: input, shape index: {}, may-alias: {3,6,8,10,13}]   ;;  %s2581_s14 = inlined_call_operand.vmem [shape: bf16[2,32,256], index: 14, kind: output, shape index: {}]  }
   0x1   :  { %s2227_s15 = smov 0  }
   0x2 LB: > { %s36_s16 = sadd.s32 1, %s2141_s30  ;;  %p1788_p0 = scmp.ge.s32.totalorder %s2145_s15, 1  ;;  %s2145_s15 = sphi %s2227_s15, %s24_s15   ;;  %s2141_s30 = sphi %s2225_s30, %s2583_s30   ;;  %s2137_s29 = sphi %s2223_s29, %s2582_s29  }
   0x3   : > { %p38_p1 = scmp.ge.s32.totalorder %s36_s16, 2  ;;  %p450_p2 = scmp.lt.s32.totalorder %s2145_s15, 3 }
   0x5   : > { %s2585_s16 = smov (%p38_p1, %s36_s16), 0  ;;  %p451_p3 = pnand %p1788_p0, %p450_p2 }
   0x6   : > { %p514_p4 = scmp.lt.s32.totalorder (!%p451_p3), %s2137_s29, 1 }
   0x7   : > { %454 = sbr.rel (%p451_p3) target bundleno = 1036 (0x40c), region = 76 }
   0xc   : > { %v2147_v0 = vmov 0   ;;  %s2587_s29 = smov (!%p514_p4, %s2137_s29), 1  ;;  %v552_v1 = vld [vmem:[%s2570_s3 + $0x10] sm:$0xff]  ;;  %v550_v2 = vld [vmem:[%s2570_s3] sm:$0xff]  ;;  %vm600_vm0 = vcmask 1041408   ;;  %v553_v3 = vld [vmem:[%s2570_s3 + $0x18] sm:$0xff] }
   0xd   : > { %639 = vmatprep.mubr.bf16.mxu0 %v2147_v0  ;;  %763 = vmatprep.mubr.bf16.mxu1 %v2147_v0  ;;  %s1883_s21 = sshll.u32 %s2587_s29, 2  ;;  %v551_v4 = vld [vmem:[%s2570_s3 + $0x8] sm:$0xff]  ;;  %v997_v11 = vld [vmem:[%s2573_s6 + $0x10] sm:$0xff]  ;;  %v1917_v12 = vld [vmem:[%s2569_s2] sm:$0xff]   ;;  %vm593_vm1 = vcmask 31744   ;;  %vm866_vm2 = vcmask 261120  }
   0xe   : > { %1915 = vset.pattern.permute.xlu0 %v2147_v0  ;;  %1916 = vset.pattern.permute.xlu1 %v2147_v0  ;;  %s521_s26 = scalar_lea.vmem %s2567_s0, %s1883_s21  ;;  %s531_s19 = scalar_lea.vmem %s2568_s1, %s1883_s21  ;;  %v998_v13 = vld [vmem:[%s2573_s6 + $0x18] sm:$0xff]  ;;  %v995_v14 = vld [vmem:[%s2573_s6] sm:$0xff]  ;;  %v996_v15 = vld [vmem:[%s2573_s6 + $0x8] sm:$0xff] }
   0xf   : > { %566 = vperm.xlu0 %1915, %v552_v1   ;;  %556 = vperm.xlu1 %1916, %v550_v2   ;;  %v1797_v5 = vld.sshfl [vmem:[%s521_s26] sm:$0x33 pattern:$0x76325410]  ;;  %v1093_v16 = vld [vmem:[%s2575_s8 + $0x10] sm:$0xff]  ;;  %v1918_v17 = vld [vmem:[%s2569_s2 + $0x8] sm:$0xff]  }
  0x10   : > { %v592_v6 = vcombine.high %v1797_v5, %v1797_v5  ;;  %v1809_v7 = vld.sshfl [vmem:[%s531_s19] sm:$0x33 pattern:$0x76325410]  ;;  %v602_v8 = vsel %vm600_vm0, %v1797_v5, 0  ;;  %v1094_v18 = vld [vmem:[%s2575_s8 + $0x18] sm:$0xff] }
  0x11   : > { %v724_v9 = vcombine.high %v1809_v7, %v1809_v7  ;;  %v726_v10 = vsel %vm600_vm0, %v1809_v7, 0  ;;  %v1254_v19 = vld [vmem:[%s2577_s10 + $0x10] sm:$0xff]  ;;  %v1255_v20 = vld [vmem:[%s2577_s10 + $0x18] sm:$0xff]  ;;  %v1091_v21 = vld [vmem:[%s2575_s8] sm:$0xff]  ;;  %s1885_s20 = sshll.u32 %s2587_s29, 5 }
  0x12   : > { %1798 = vmatprep.subr.msk.bf16.mxu0 %vm600_vm0, %v592_v6  ;;  %v1092_v22 = vld [vmem:[%s2575_s8 + $0x8] sm:$0xff]  ;;  %v1252_v23 = vld [vmem:[%s2577_s10] sm:$0xff]  ;;  %v1565_v27 = vld [vmem:[%s2580_s13 + $0x10] sm:$0xff]  ;;  %s541_s24 = scalar_lea.vmem %s2581_s14, %s1885_s20 }
  0x13   : > { %571 = vperm.xlu0 %1915, %v553_v3   ;;  %561 = vperm.xlu1 %1916, %v551_v4   ;;  %v1253_v24 = vld [vmem:[%s2577_s10 + $0x8] sm:$0xff]  ;;  %v1563_v25 = vld [vmem:[%s2580_s13] sm:$0xff]  ;;  %v1566_v28 = vld [vmem:[%s2580_s13 + $0x18] sm:$0xff] }
  0x14   : > { %1810 = vmatprep.subr.msk.bf16.mxu1 %vm600_vm0, %v724_v9  ;;  %622 = vmatpush1.bf16.msra.mxu0 %v602_v8  ;;  %v1564_v26 = vld [vmem:[%s2580_s13 + $0x8] sm:$0xff] }
  0x15   : > { %746 = vmatpush1.bf16.msra.mxu1 %v726_v10 }
  0x17   : > { %1011 = vperm.xlu0 %1915, %v997_v11   ;;  %1016 = vperm.xlu1 %1916, %v998_v13  }
  0x18   : > { %1799 = vmatmul.mubr.msk.bf16.vlgmr.msra.gmra.mxu0 %vm593_vm1, %v1917_v12  ;;  %1811 = vmatmul.mubr.msk.bf16.vlgmr.msra.gmra.mxu1 %vm593_vm1, %v1917_v12 }
  0x19   : > { %649 = vmatprep.mubr.bf16.mxu0 %v2147_v0  ;;  %773 = vmatprep.mubr.bf16.mxu1 %v2147_v0 }
  0x1b   : > { %1001 = vperm.xlu0 %1915, %v995_v14   ;;  %1006 = vperm.xlu1 %1916, %v996_v15  }
  0x1f   : > { %1107 = vperm.xlu0 %1915, %v1093_v16   ;;  %1112 = vperm.xlu1 %1916, %v1094_v18  }
  0x20   : > { %1800 = vmatmul.mubr.msk.bf16.gmra.mxu0 %vm593_vm1, %v1918_v17  ;;  %1812 = vmatmul.mubr.msk.bf16.gmra.mxu1 %vm593_vm1, %v1918_v17 }
  0x21   : > { %905 = vmatprep.mubr.bf16.mxu0 %v2147_v0  ;;  %974 = vmatprep.mubr.bf16.mxu1 %v2147_v0 }
  0x23   : > { %1268 = vperm.xlu0 %1915, %v1254_v19   ;;  %1273 = vperm.xlu1 %1916, %v1255_v20  }
  0x27   : > { %1097 = vperm.xlu0 %1915, %v1091_v21   ;;  %1102 = vperm.xlu1 %1916, %v1092_v22  }
  0x2b   : > { %1258 = vperm.xlu0 %1915, %v1252_v23   ;;  %1263 = vperm.xlu1 %1916, %v1253_v24  }
  0x2f   : > { %1569 = vperm.xlu0 %1915, %v1563_v25   ;;  %1574 = vperm.xlu1 %1916, %v1564_v26  }
  0x33   : > { %1579 = vperm.xlu0 %1915, %v1565_v27   ;;  %1584 = vperm.xlu1 %1916, %v1566_v28  }
  0x8a   : > { %v557_v29 = vpop.permute.xlu1 %556  ;;  %v567_v45 = vpop.permute.xlu0 %566 }
  0x8e   : > { %v562_v38 = vpop.permute.xlu1 %561  ;;  %v572_v1 = vpop.permute.xlu0 %571 }
  0xd8   : > { %v641_v30 = vpop.f32.mrf.mxu0  ;;  %v765_v32 = vpop.f32.mrf.mxu1 }
  0xd9   : > { %v2332_v31 = vadd.f32 %v641_v30, %v557_v29  ;;  %v2334_v33 = vadd.f32 %v765_v32, %v557_v29 }
  0xda   : > { %v643_v34 = vpop.f32.mrf.mxu0  ;;  %v767_v37 = vpop.f32.mrf.mxu1 }
  0xdb   : > { %v1801_v35 = vmul.f32 -1.442695, %v2332_v31  ;;  %v2337_v36 = vadd.f32 %v643_v34, %v557_v29  ;;  %v1813_v39 = vmul.f32 -1.442695, %v2334_v33  ;;  %v2340_v40 = vadd.f32 %v767_v37, %v557_v29 }
  0xdc   : > { %v645_v41 = vpop.f32.mrf.mxu0  ;;  %v769_v44 = vpop.f32.mrf.mxu1 }
  0xdd   : > { %1931 = vpow2.f32 %v1801_v35  ;;  %v1802_v42 = vmul.f32 -1.442695, %v2337_v36  ;;  %v2343_v43 = vadd.f32 %v645_v41, %v562_v38  ;;  %v1814_v46 = vmul.f32 -1.442695, %v2340_v40 }
  0xde   : > { %1933 = vpow2.f32 %v1813_v39  ;;  %v2346_v47 = vadd.f32 %v769_v44, %v562_v38  ;;  %v647_v48 = vpop.f32.mrf.mxu0  ;;  %v771_v51 = vpop.f32.mrf.mxu1 }
  0xdf   : > { %1935 = vpow2.f32 %v1802_v42  ;;  %v1803_v49 = vmul.f32 -1.442695, %v2343_v43  ;;  %v2349_v50 = vadd.f32 %v647_v48, %v562_v38  ;;  %v2352_v53 = vadd.f32 %v771_v51, %v562_v38 }
  0xe0   : > { %1937 = vpow2.f32 %v1814_v46  ;;  %v1815_v52 = vmul.f32 -1.442695, %v2346_v47  ;;  %v651_v54 = vpop.f32.mrf.mxu0  ;;  %v775_v57 = vpop.f32.mrf.mxu1 }
  0xe1   : > { %1939 = vpow2.f32 %v1803_v49  ;;  %v1804_v55 = vmul.f32 -1.442695, %v2349_v50  ;;  %v2355_v56 = vadd.f32 %v651_v54, %v567_v45  ;;  %v1816_v58 = vmul.f32 -1.442695, %v2352_v53 }
  0xe2   : > { %1941 = vpow2.f32 %v1815_v52  ;;  %v2358_v59 = vadd.f32 %v775_v57, %v567_v45  ;;  %v653_v60 = vpop.f32.mrf.mxu0  ;;  %v777_v63 = vpop.f32.mrf.mxu1 }
  0xe3   : > { %1943 = vpow2.f32 %v1804_v55  ;;  %v1805_v61 = vmul.f32 -1.442695, %v2355_v56  ;;  %v2361_v62 = vadd.f32 %v653_v60, %v567_v45  ;;  %v2364_v3 = vadd.f32 %v777_v63, %v567_v45 }
  0xe4   : > { %1945 = vpow2.f32 %v1816_v58  ;;  %v1817_v2 = vmul.f32 -1.442695, %v2358_v59  ;;  %v655_v4 = vpop.f32.mrf.mxu0  ;;  %v779_v7 = vpop.f32.mrf.mxu1 }
  0xe5   : > { %1947 = vpow2.f32 %v1805_v61  ;;  %v1806_v5 = vmul.f32 -1.442695, %v2361_v62  ;;  %v2367_v6 = vadd.f32 %v655_v4, %v572_v1  ;;  %v1818_v8 = vmul.f32 -1.442695, %v2364_v3 }
  0xe6   : > { %1949 = vpow2.f32 %v1817_v2  ;;  %v2370_v9 = vadd.f32 %v779_v7, %v572_v1  ;;  %v657_v10 = vpop.f32.mrf.mxu0  ;;  %v781_v13 = vpop.f32.mrf.mxu1 }
  0xe7   : > { %1951 = vpow2.f32 %v1806_v5  ;;  %v1807_v11 = vmul.f32 -1.442695, %v2367_v6  ;;  %v2373_v12 = vadd.f32 %v657_v10, %v572_v1  ;;  %v2376_v15 = vadd.f32 %v781_v13, %v572_v1 }
  0xe8   : > { %1953 = vpow2.f32 %v1818_v8  ;;  %v1819_v14 = vmul.f32 -1.442695, %v2370_v9 }
  0xe9   : > { %1955 = vpow2.f32 %v1807_v11  ;;  %v1808_v16 = vmul.f32 -1.442695, %v2373_v12  ;;  %v1820_v18 = vmul.f32 -1.442695, %v2376_v15 }
  0xea   : > { %v1932_v17 = vpop.eup %1931  ;;  %1957 = vpow2.f32 %v1819_v14 }
  0xeb   : > { %v1934_v19 = vpop.eup %1933  ;;  %1959 = vpow2.f32 %v1808_v16  ;;  %v684_v55 = vadd.f32 1.0, %v1932_v17 }
  0xec   : > { %v1936_v20 = vpop.eup %1935  ;;  %1961 = vpow2.f32 %v1820_v18  ;;  %v808_v58 = vadd.f32 1.0, %v1934_v19 }
  0xed   : > { %v1938_v21 = vpop.eup %1937  ;;  %v685_v22 = vadd.f32 1.0, %v1936_v20 }
  0xee   : > { %v1940_v23 = vpop.eup %1939  ;;  %v809_v24 = vadd.f32 1.0, %v1938_v21 }
  0xef   : > { %v1942_v25 = vpop.eup %1941  ;;  %v686_v26 = vadd.f32 1.0, %v1940_v23  ;;  %1963 = vrcp.f32 %v685_v22 }
  0xf0   : > { %v1944_v27 = vpop.eup %1943  ;;  %1965 = vrcp.f32 %v809_v24  ;;  %v810_v52 = vadd.f32 1.0, %v1942_v25 }
  0xf1   : > { %v1946_v28 = vpop.eup %1945  ;;  %v687_v29 = vadd.f32 1.0, %v1944_v27  ;;  %1967 = vrcp.f32 %v686_v26 }
  0xf2   : > { %v1948_v30 = vpop.eup %1947  ;;  %v811_v32 = vadd.f32 1.0, %v1946_v28 }
  0xf3   : > { %v1950_v34 = vpop.eup %1949  ;;  %1969 = vrcp.f32 %v687_v29  ;;  %v688_v35 = vadd.f32 1.0, %v1948_v30  ;;  %v1920_v29 = vld [vmem:[%s2571_s4] sm:$0xff]   ;;  %v1921_v30 = vld [vmem:[%s2572_s5 + $0x8] sm:$0xff]  }
  0xf4   : > { %v1952_v37 = vpop.eup %1951  ;;  %1971 = vrcp.f32 %v811_v32  ;;  %v812_v38 = vadd.f32 1.0, %v1950_v34  ;;  %v1923_v32 = vld [vmem:[%s2576_s9] sm:$0xff]   ;;  %v1924_v34 = vld [vmem:[%s2576_s9 + $0x8] sm:$0xff]  }
  0xf5   : > { %v1954_v39 = vpop.eup %1953  ;;  %1973 = vrcp.f32 %v688_v35  ;;  %v689_v41 = vadd.f32 1.0, %v1952_v37  ;;  %v1012_v35 = vpop.permute.xlu0 %1011 }
  0xf6   : > { %v1956_v42 = vpop.eup %1955  ;;  %1975 = vrcp.f32 %v812_v38  ;;  %v813_v44 = vadd.f32 1.0, %v1954_v39  ;;  %v1017_v37 = vpop.permute.xlu1 %1016 }
  0xf7   : > { %v1958_v45 = vpop.eup %1957  ;;  %1977 = vrcp.f32 %v689_v41  ;;  %v690_v46 = vadd.f32 1.0, %v1956_v42 }
  0xf8   : > { %v1960_v48 = vpop.eup %1959  ;;  %1979 = vrcp.f32 %v813_v44  ;;  %v814_v49 = vadd.f32 1.0, %v1958_v45 }
  0xf9   : > { %v1962_v51 = vpop.eup %1961  ;;  %1981 = vrcp.f32 %v690_v46  ;;  %v691_v54 = vadd.f32 1.0, %v1960_v48  ;;  %v1002_v38 = vpop.permute.xlu0 %1001 }
  0xfa   : > { %1983 = vrcp.f32 %v814_v49  ;;  %v815_v57 = vadd.f32 1.0, %v1962_v51  ;;  %v1007_v39 = vpop.permute.xlu1 %1006 }
  0xfb   : > { %1985 = vrcp.f32 %v691_v54 }
  0xfc   : > { %1987 = vrcp.f32 %v815_v57  ;;  %v1964_v60 = vpop.eup %1963 }
  0xfd   : > { %1989 = vrcp.f32 %v810_v52  ;;  %v1966_v61 = vpop.eup %1965  ;;  %v2400_v25 = vmul.f32 %v1964_v60, %v2337_v36  ;;  %v2450_v41 = vpop.permute.xlu0 %1107 }
  0xfe   : > { %1991 = vrcp.f32 %v684_v55  ;;  %v1968_v63 = vpop.eup %1967  ;;  %v833_v26 = vmul.f32 %v1966_v61, %v2340_v40  ;;  %v2452_v45 = vpop.permute.xlu1 %1112 }
  0xff   : > { %1993 = vrcp.f32 %v808_v58 }
 0x100   : > { %v1970_v1 = vpop.eup %1969 }
 0x101   : > { %v1972_v2 = vpop.eup %1971  ;;  %v2384_v17 = vmul.f32 %v1970_v1, %v2349_v50  ;;  %v2454_v52 = vpop.permute.xlu0 %1268 }
 0x102   : > { %v1974_v4 = vpop.eup %1973  ;;  %v835_v22 = vmul.f32 %v1972_v2, %v2352_v53  ;;  %v2407_v53 = vmul.f32 %v1968_v63, %v2343_v43  ;;  %v2458_v61 = vpop.permute.xlu1 %1273 }
 0x103   : > { %v1976_v5 = vpop.eup %1975  ;;  %v2395_v23 = vmul.f32 %v1974_v4, %v2355_v56  ;;  %v841_v36 = vpack.c.bf16 %v2384_v17, %v2400_v25 }
 0x104   : > { %v1978_v7 = vpop.eup %1977  ;;  %v845_v40 = vpack.c.bf16 %v835_v22, %v833_v26 }
 0x105   : > { %v1980_v8 = vpop.eup %1979  ;;  %v2387_v18 = vmul.f32 %v1978_v7, %v2361_v62  ;;  %v836_v62 = vmul.f32 %v1976_v5, %v2358_v59 }
 0x106   : > { %v1982_v10 = vpop.eup %1981 }
 0x107   : > { %v1984_v11 = vpop.eup %1983  ;;  %v2381_v14 = vmul.f32 %v1982_v10, %v2367_v6  ;;  %v837_v6 = vmul.f32 %v1980_v8, %v2364_v3 }
 0x108   : > { %v1986_v13 = vpop.eup %1985  ;;  %v838_v19 = vmul.f32 %v1984_v11, %v2370_v9  ;;  %v2463_v11 = vpop.permute.xlu0 %1097 }
 0x109   : > { %v1988_v16 = vpop.eup %1987  ;;  %v2391_v20 = vmul.f32 %v1986_v13, %v2373_v12  ;;  %v842_v56 = vpack.c.bf16 %v2381_v14, %v2395_v23 }
 0x10a   : > { %v1990_v21 = vpop.eup %1989  ;;  %v839_v24 = vmul.f32 %v1988_v16, %v2376_v15  ;;  %v846_v27 = vpack.c.bf16 %v838_v19, %v836_v62  ;;  %v2472_v62 = vpop.permute.xlu1 %1102 }
 0x10b   : > { %v1992_v50 = vpop.eup %1991  ;;  %v843_v9 = vpack.c.bf16 %v2391_v20, %v2387_v18  ;;  %v834_v15 = vmul.f32 %v1990_v21, %v2346_v47 }
 0x10c   : > { %v1994_v12 = vpop.eup %1993  ;;  %v847_v3 = vpack.c.bf16 %v839_v24, %v837_v6  ;;  %v2415_v59 = vmul.f32 %v1992_v50, %v2332_v31  ;;  %v1919_v31 = vld [vmem:[%s2572_s5] sm:$0xff]  }
 0x10d   : > { %954 = vmatprep.subr.bf16.mxu1 %v843_v9  ;;  %v832_v43 = vmul.f32 %v1994_v12, %v2334_v33  ;;  %v1922_v33 = vld [vmem:[%s2571_s4 + $0x8] sm:$0xff]  }
 0x10e   : > { %885 = vmatprep.subr.bf16.mxu0 %v847_v3  ;;  %955 = vmatpush1.bf16.msra.mxu1 %v842_v56  ;;  %v840_v28 = vpack.c.bf16 %v2407_v53, %v2415_v59 }
 0x10f   : > { %886 = vmatpush1.bf16.msra.mxu0 %v846_v27  ;;  %956 = vmatprep.subr.bf16.mxu1 %v841_v36  ;;  %v844_v47 = vpack.c.bf16 %v834_v15, %v832_v43 }
 0x110   : > { %887 = vmatprep.subr.bf16.mxu0 %v845_v40 }
 0x112   : > { %957 = vmatpush1.bf16.msra.mxu1 %v840_v28 }
 0x113   : > { %888 = vmatpush1.bf16.msra.mxu0 %v844_v47  ;;  %1304 = vmatprep.subr.bf16.mxu1 %v843_v9 }
 0x115   : > { %1827 = vmatmul.mubr.msk.bf16.vlgmr.msra.gmra.mxu1 %vm866_vm2, %v1920_v29 }
 0x116   : > { %1823 = vmatmul.mubr.msk.bf16.vlgmr.msra.gmra.mxu0 %vm866_vm2, %v1919_v31  ;;  %1305 = vmatpush1.bf16.msra.mxu1 %v842_v56 }
 0x117   : > { %1306 = vmatprep.subr.bf16.mxu1 %v841_v36  ;;  %915 = vmatprep.mubr.bf16.mxu0 %v2147_v0 }
 0x118   : > { %984 = vmatprep.mubr.bf16.mxu1 %v2147_v0 }
 0x11a   : > { %1307 = vmatpush1.bf16.msra.mxu1 %v840_v28  ;;  %v1259_v28 = vpop.permute.xlu0 %1258 }
 0x11d   : > { %1828 = vmatmul.mubr.msk.bf16.gmra.mxu1 %vm866_vm2, %v1922_v33 }
 0x11e   : > { %1824 = vmatmul.mubr.msk.bf16.gmra.mxu0 %vm866_vm2, %v1921_v30  ;;  %1324 = vmatprep.mubr.bf16.mxu1 %v2147_v0 }
 0x11f   : > { %1163 = vmatprep.mubr.bf16.mxu0 %v2147_v0 }
 0x125   : > { %1851 = vmatmul.mubr.msk.bf16.vlgmr.msra.gmra.mxu1 %vm866_vm2, %v1923_v32 }
 0x126   : > { %1334 = vmatprep.mubr.bf16.mxu1 %v2147_v0 }
 0x12d   : > { %1852 = vmatmul.mubr.msk.bf16.gmra.mxu1 %vm866_vm2, %v1924_v34  ;;  %v1264_v34 = vpop.permute.xlu1 %1263 }
 0x12e   : > { %1542 = vmatprep.mubr.bf16.mxu1 %v2147_v0 }
 0x1d5   : > { %v976_v42 = vpop.f32.mrf.mxu1 }
 0x1d6   : > { %v907_v44 = vpop.f32.mrf.mxu0 }
 0x1d7   : > { %v978_v46 = vpop.f32.mrf.mxu1  ;;  %v977_v4 = vadd.f32 %v976_v42, %v907_v44 }
 0x1d8   : > { %v909_v48 = vpop.f32.mrf.mxu0 }
 0x1d9   : > { %v979_v49 = vadd.f32 %v978_v46, %v909_v48  ;;  %v980_v51 = vpop.f32.mrf.mxu1  ;;  %v2470_v24 = vadd.f32 %v1002_v38, %v977_v4 }
 0x1da   : > { %v911_v54 = vpop.f32.mrf.mxu0 }
 0x1db   : > { %v2456_v55 = vadd.f32 %v1002_v38, %v979_v49  ;;  %v982_v57 = vpop.f32.mrf.mxu1  ;;  %v981_v58 = vadd.f32 %v980_v51, %v911_v54  ;;  %v1829_v47 = vmul.f32 -1.442695, %v2470_v24 }
 0x1dc   : > { %v913_v60 = vpop.f32.mrf.mxu0 }
 0x1dd   : > { %v1830_v63 = vmul.f32 -1.442695, %v2456_v55  ;;  %v983_v1 = vadd.f32 %v982_v57, %v913_v60  ;;  %v986_v2 = vpop.f32.mrf.mxu1  ;;  %v2465_v13 = vadd.f32 %v1007_v39, %v981_v58 }
 0x1de   : > { %v917_v5 = vpop.f32.mrf.mxu0 }
 0x1df   : > { %1995 = vpow2.f32 %v1830_v63  ;;  %v2461_v7 = vadd.f32 %v1007_v39, %v983_v1  ;;  %v987_v8 = vadd.f32 %v986_v2, %v917_v5  ;;  %v988_v10 = vpop.f32.mrf.mxu1  ;;  %v1831_v3 = vmul.f32 -1.442695, %v2465_v13 }
 0x1e0   : > { %v919_v16 = vpop.f32.mrf.mxu0 }
 0x1e1   : > { %v1832_v19 = vmul.f32 -1.442695, %v2461_v7  ;;  %v2468_v21 = vadd.f32 %v1012_v35, %v987_v8  ;;  %v989_v22 = vadd.f32 %v988_v10, %v919_v16  ;;  %v990_v6 = vpop.f32.mrf.mxu1 }
 0x1e2   : > { %v921_v50 = vpop.f32.mrf.mxu0 }
 0x1e3   : > { %1997 = vpow2.f32 %v1832_v19  ;;  %v1833_v9 = vmul.f32 -1.442695, %v2468_v21  ;;  %v2475_v12 = vadd.f32 %v1012_v35, %v989_v22  ;;  %v991_v26 = vadd.f32 %v990_v6, %v921_v50  ;;  %v992_v56 = vpop.f32.mrf.mxu1 }
 0x1e4   : > { %v923_v15 = vpop.f32.mrf.mxu0 }
 0x1e5   : > { %v1834_v27 = vmul.f32 -1.442695, %v2475_v12  ;;  %v2479_v36 = vadd.f32 %v1017_v37, %v991_v26  ;;  %v993_v40 = vadd.f32 %v992_v56, %v923_v15  ;;  %v1326_v43 = vpop.f32.mrf.mxu1  ;;  %1999 = vpow2.f32 %v1833_v9 }
 0x1e6   : > { %v1327_v33 = vadd.f32 %v1326_v43, %v1259_v28 }
 0x1e7   : > { %2001 = vpow2.f32 %v1834_v27  ;;  %v1835_v29 = vmul.f32 -1.442695, %v2479_v36  ;;  %v2483_v31 = vadd.f32 %v1017_v37, %v993_v40  ;;  %v1328_v30 = vpop.f32.mrf.mxu1 }
 0x1e8   : > { %2003 = vpow2.f32 %v1831_v3  ;;  %v1329_v32 = vadd.f32 %v1328_v30, %v1259_v28  ;;  %v1853_v44 = vmul.f32 -1.442695, %v1327_v33 }
 0x1e9   : > { %2005 = vpow2.f32 %v1835_v29  ;;  %v1836_v35 = vmul.f32 -1.442695, %v2483_v31  ;;  %v1330_v38 = vpop.f32.mrf.mxu1 }
 0x1ea   : > { %2007 = vpow2.f32 %v1829_v47  ;;  %v1854_v39 = vmul.f32 -1.442695, %v1329_v32  ;;  %v1331_v42 = vadd.f32 %v1330_v38, %v1264_v34 }
 0x1eb   : > { %2009 = vpow2.f32 %v1836_v35  ;;  %v1332_v46 = vpop.f32.mrf.mxu1 }
 0x1ec   : > { %v1996_v48 = vpop.eup %1995  ;;  %v1333_v49 = vadd.f32 %v1332_v46, %v1264_v34  ;;  %v1855_v51 = vmul.f32 -1.442695, %v1331_v42  ;;  %2011 = vpow2.f32 %v1854_v39 }
 0x1ed   : > { %v1336_v37 = vpop.f32.mrf.mxu1  ;;  %v1052_v58 = vadd.f32 1.0, %v1996_v48  ;;  %2013 = vpow2.f32 %v1853_v44 }
 0x1ee   : > { %v1856_v54 = vmul.f32 -1.442695, %v1333_v49  ;;  %v1337_v57 = vadd.f32 %v1336_v37, %v2454_v52 }
 0x1ef   : > { %v1338_v60 = vpop.f32.mrf.mxu1 }
 0x1f0   : > { %v1998_v63 = vpop.eup %1997  ;;  %2015 = vpow2.f32 %v1856_v54  ;;  %v1857_v1 = vmul.f32 -1.442695, %v1337_v57  ;;  %v1339_v2 = vadd.f32 %v1338_v60, %v2454_v52 }
 0x1f1   : > { %v1054_v4 = vadd.f32 1.0, %v1998_v63  ;;  %2017 = vpow2.f32 %v1855_v51  ;;  %v1340_v5 = vpop.f32.mrf.mxu1 }
 0x1f2   : > { %2019 = vpow2.f32 %v1857_v1  ;;  %v1858_v8 = vmul.f32 -1.442695, %v1339_v2  ;;  %v1341_v10 = vadd.f32 %v1340_v5, %v2458_v61  ;;  %v2000_v16 = vpop.eup %1999 }
 0x1f3   : > { %2021 = vrcp.f32 %v1052_v58  ;;  %v1342_v19 = vpop.f32.mrf.mxu1  ;;  %v1055_v52 = vadd.f32 1.0, %v2000_v16 }
 0x1f4   : > { %v2002_v22 = vpop.eup %2001  ;;  %2023 = vpow2.f32 %v1858_v8  ;;  %v1859_v6 = vmul.f32 -1.442695, %v1341_v10  ;;  %v1343_v50 = vadd.f32 %v1342_v19, %v2458_v61 }
 0x1f5   : > { %v2004_v9 = vpop.eup %2003  ;;  %2025 = vrcp.f32 %v1054_v4  ;;  %v1056_v26 = vadd.f32 1.0, %v2002_v22 }
 0x1f6   : > { %v2006_v56 = vpop.eup %2005  ;;  %2027 = vpow2.f32 %v1859_v6  ;;  %v1860_v3 = vmul.f32 -1.442695, %v1343_v50  ;;  %v1053_v43 = vadd.f32 1.0, %v2004_v9 }
 0x1f7   : > { %v2008_v15 = vpop.eup %2007  ;;  %2029 = vrcp.f32 %v1056_v26  ;;  %v1057_v27 = vadd.f32 1.0, %v2006_v56 }
 0x1f8   : > { %v2010_v40 = vpop.eup %2009  ;;  %2031 = vpow2.f32 %v1860_v3  ;;  %v1051_v47 = vadd.f32 1.0, %v2008_v15 }
 0x1f9   : > { %2033 = vrcp.f32 %v1057_v27  ;;  %v1058_v28 = vadd.f32 1.0, %v2010_v40  ;;  %v2012_v29 = vpop.eup %2011 }
 0x1fa   : > { %2035 = vrcp.f32 %v1055_v52  ;;  %v2014_v61 = vpop.eup %2013  ;;  %v1370_v32 = vadd.f32 1.0, %v2012_v29 }
 0x1fb   : > { %2037 = vrcp.f32 %v1058_v28  ;;  %v1369_v58 = vadd.f32 1.0, %v2014_v61 }
 0x1fc   : > { %2039 = vrcp.f32 %v1053_v43 }
 0x1fd   : > { %v2016_v33 = vpop.eup %2015  ;;  %2041 = vrcp.f32 %v1051_v47 }
 0x1fe   : > { %v2018_v30 = vpop.eup %2017  ;;  %v1372_v35 = vadd.f32 1.0, %v2016_v33  ;;  %2043 = vrcp.f32 %v1370_v32  ;;  %v1926_v32 = vld [vmem:[%s2574_s7 + $0x8] sm:$0xff]  }
 0x1ff   : > { %v2020_v34 = vpop.eup %2019  ;;  %v1371_v49 = vadd.f32 1.0, %v2018_v30 }
 0x200   : > { %v2022_v38 = vpop.eup %2021  ;;  %v1373_v42 = vadd.f32 1.0, %v2020_v34  ;;  %2045 = vrcp.f32 %v1372_v35 }
 0x201   : > { %v2024_v39 = vpop.eup %2023  ;;  %v1076_v22 = vmul.f32 %v2022_v38, %v2456_v55 }
 0x202   : > { %v2026_v44 = vpop.eup %2025  ;;  %v1374_v46 = vadd.f32 1.0, %v2024_v39 }
 0x203   : > { %v2028_v48 = vpop.eup %2027  ;;  %v1078_v5 = vmul.f32 %v2026_v44, %v2461_v7 }
 0x204   : > { %v2030_v51 = vpop.eup %2029  ;;  %2047 = vrcp.f32 %v1374_v46  ;;  %v1375_v37 = vadd.f32 1.0, %v2028_v48 }
 0x205   : > { %v2032_v54 = vpop.eup %2031  ;;  %2049 = vrcp.f32 %v1373_v42  ;;  %v1080_v8 = vmul.f32 %v2030_v51, %v2475_v12 }
 0x206   : > { %v2034_v57 = vpop.eup %2033  ;;  %2051 = vrcp.f32 %v1375_v37  ;;  %v1376_v60 = vadd.f32 1.0, %v2032_v54  ;;  %v1927_v37 = vld [vmem:[%s2579_s12] sm:$0xff]   ;;  %v1929_v54 = vld [vmem:[%s2579_s12 + $0x8] sm:$0xff]  }
 0x207   : > { %v2036_v63 = vpop.eup %2035  ;;  %2053 = vrcp.f32 %v1371_v49  ;;  %v1081_v2 = vmul.f32 %v2034_v57, %v2479_v36  ;;  %v1084_v36 = vpack.c.bf16 %v1078_v5, %v1076_v22 }
 0x208   : > { %v2038_v1 = vpop.eup %2037  ;;  %2055 = vrcp.f32 %v1376_v60  ;;  %v1079_v16 = vmul.f32 %v2036_v63, %v2468_v21  ;;  %v1925_v21 = vld [vmem:[%s2574_s7] sm:$0xff]  }
 0x209   : > { %v2040_v4 = vpop.eup %2039  ;;  %v1082_v10 = vmul.f32 %v2038_v1, %v2483_v31  ;;  %2057 = vrcp.f32 %v1369_v58 }
 0x20a   : > { %v2042_v19 = vpop.eup %2041  ;;  %v1077_v50 = vmul.f32 %v2040_v4, %v2465_v13  ;;  %v1085_v9 = vpack.c.bf16 %v1081_v2, %v1079_v16 }
 0x20b   : > { %v1086_v6 = vpack.c.bf16 %v1082_v10, %v1080_v8  ;;  %v1075_v26 = vmul.f32 %v2042_v19, %v2470_v24  ;;  %v2044_v7 = vpop.eup %2043 }
 0x20c   : > { %v1394_v47 = vadd.f32 1.0, %v2044_v7 }
 0x20d   : > { %1143 = vmatprep.subr.bf16.mxu0 %v1086_v6  ;;  %v2046_v12 = vpop.eup %2045  ;;  %v1083_v56 = vpack.c.bf16 %v1077_v50, %v1075_v26 }
 0x20e   : > { %1144 = vmatpush1.bf16.msra.mxu0 %v1085_v9  ;;  %v1396_v24 = vadd.f32 1.0, %v2046_v12  ;;  %v1402_v42 = vmul.f32 %v1394_v47, %v1076_v22 }
 0x20f   : > { %1145 = vmatprep.subr.bf16.mxu0 %v1084_v36 }
 0x210   : > { %v1404_v34 = vmul.f32 %v1396_v24, %v1078_v5 }
 0x211   : > { %v2048_v31 = vpop.eup %2047 }
 0x212   : > { %v2050_v52 = vpop.eup %2049  ;;  %1146 = vmatpush1.bf16.msra.mxu0 %v1083_v56  ;;  %v1398_v15 = vadd.f32 1.0, %v2048_v31  ;;  %v1422_v48 = vpack.c.bf16 %v1404_v34, %v1402_v42 }
 0x213   : > { %v2052_v55 = vpop.eup %2051  ;;  %v1397_v40 = vadd.f32 1.0, %v2050_v52 }
 0x214   : > { %v2054_v3 = vpop.eup %2053  ;;  %v1399_v13 = vadd.f32 1.0, %v2052_v55  ;;  %v1406_v61 = vmul.f32 %v1398_v15, %v1080_v8 }
 0x215   : > { %v2056_v27 = vpop.eup %2055  ;;  %1839 = vmatmul.mubr.msk.bf16.vlgmr.msra.gmra.mxu0 %vm866_vm2, %v1925_v21  ;;  %v1395_v29 = vadd.f32 1.0, %v2054_v3  ;;  %v1405_v39 = vmul.f32 %v1397_v40, %v1079_v16 }
 0x216   : > { %1173 = vmatprep.mubr.bf16.mxu0 %v2147_v0  ;;  %v1400_v43 = vadd.f32 1.0, %v2056_v27  ;;  %v2058_v28 = vpop.eup %2057  ;;  %v1407_v30 = vmul.f32 %v1399_v13, %v1081_v2 }
 0x217   : > { %v1393_v35 = vadd.f32 1.0, %v2058_v28  ;;  %v1403_v46 = vmul.f32 %v1395_v29, %v1077_v50 }
 0x218   : > { %v1408_v33 = vmul.f32 %v1400_v43, %v1082_v10  ;;  %v1423_v44 = vpack.c.bf16 %v1407_v30, %v1405_v39 }
 0x219   : > { %v1401_v49 = vmul.f32 %v1393_v35, %v1075_v26 }
 0x21a   : > { %v1424_v38 = vpack.c.bf16 %v1408_v33, %v1406_v61 }
 0x21b   : > { %v1421_v51 = vpack.c.bf16 %v1403_v46, %v1401_v49 }
 0x21c   : > { %1453 = vmatprep.subr.bf16.mxu0 %v1424_v38 }
 0x21d   : > { %1840 = vmatmul.mubr.msk.bf16.gmra.mxu0 %vm866_vm2, %v1926_v32 }
 0x21e   : > { %1454 = vmatpush1.bf16.msra.mxu0 %v1423_v44  ;;  %1473 = vmatprep.mubr.bf16.mxu0 %v2147_v0 }
 0x21f   : > { %1455 = vmatprep.subr.bf16.mxu0 %v1422_v48 }
 0x222   : > { %1456 = vmatpush1.bf16.msra.mxu0 %v1421_v51 }
 0x225   : > { %1863 = vmatmul.mubr.msk.bf16.vlgmr.msra.gmra.mxu0 %vm866_vm2, %v1927_v37 }
 0x226   : > { %1483 = vmatprep.mubr.bf16.mxu0 %v2147_v0 }
 0x22d   : > { %1864 = vmatmul.mubr.msk.bf16.gmra.mxu0 %vm866_vm2, %v1929_v54 }
 0x2d5   : > { %v1165_v57 = vpop.f32.mrf.mxu0 }
 0x2d6   : > { %v1166_v8 = vadd.f32 %v1165_v57, %v2463_v11 }
 0x2d7   : > { %v1167_v58 = vpop.f32.mrf.mxu0 }
 0x2d8   : > { %v1168_v60 = vadd.f32 %v1167_v58, %v2463_v11  ;;  %v1841_v36 = vmul.f32 -1.442695, %v1166_v8 }
 0x2d9   : > { %v1169_v63 = vpop.f32.mrf.mxu0 }
 0x2da   : > { %v1842_v1 = vmul.f32 -1.442695, %v1168_v60  ;;  %v1170_v2 = vadd.f32 %v1169_v63, %v2472_v62 }
 0x2db   : > { %v1171_v4 = vpop.f32.mrf.mxu0 }
 0x2dc   : > { %v1172_v5 = vadd.f32 %v1171_v4, %v2472_v62  ;;  %2059 = vpow2.f32 %v1842_v1  ;;  %v1843_v22 = vmul.f32 -1.442695, %v1170_v2 }
 0x2dd   : > { %v1175_v10 = vpop.f32.mrf.mxu0 }
 0x2de   : > { %v1844_v16 = vmul.f32 -1.442695, %v1172_v5  ;;  %v1176_v19 = vadd.f32 %v1175_v10, %v2450_v41 }
 0x2df   : > { %v1177_v6 = vpop.f32.mrf.mxu0 }
 0x2e0   : > { %2061 = vpow2.f32 %v1844_v16  ;;  %v1845_v50 = vmul.f32 -1.442695, %v1176_v19  ;;  %v1178_v9 = vadd.f32 %v1177_v6, %v2450_v41 }
 0x2e1   : > { %v1179_v26 = vpop.f32.mrf.mxu0 }
 0x2e2   : > { %2063 = vpow2.f32 %v1845_v50  ;;  %v1846_v7 = vmul.f32 -1.442695, %v1178_v9  ;;  %v1180_v12 = vadd.f32 %v1179_v26, %v2452_v45 }
 0x2e3   : > { %2065 = vpow2.f32 %v1843_v22  ;;  %v1181_v62 = vpop.f32.mrf.mxu0  ;;  %v1570_v22 = vpop.permute.xlu0 %1569 }
 0x2e4   : > { %2067 = vpow2.f32 %v1846_v7  ;;  %v1847_v11 = vmul.f32 -1.442695, %v1180_v12  ;;  %v1182_v56 = vadd.f32 %v1181_v62, %v2452_v45 }
 0x2e5   : > { %2069 = vpow2.f32 %v1841_v36 }
 0x2e6   : > { %2071 = vpow2.f32 %v1847_v11  ;;  %v1848_v31 = vmul.f32 -1.442695, %v1182_v56 }
 0x2e8   : > { %2073 = vpow2.f32 %v1848_v31 }
 0x2e9   : > { %v2060_v21 = vpop.eup %2059 }
 0x2ea   : > { %v1209_v55 = vadd.f32 1.0, %v2060_v21 }
 0x2ec   : > { %2075 = vrcp.f32 %v1209_v55 }
 0x2ed   : > { %v2062_v52 = vpop.eup %2061 }
 0x2ee   : > { %v1211_v3 = vadd.f32 1.0, %v2062_v52 }
 0x2ef   : > { %v2064_v41 = vpop.eup %2063 }
 0x2f0   : > { %v2066_v13 = vpop.eup %2065  ;;  %v1212_v27 = vadd.f32 1.0, %v2064_v41  ;;  %2077 = vrcp.f32 %v1211_v3  ;;  %v1580_v3 = vpop.permute.xlu0 %1579 }
 0x2f1   : > { %v2068_v15 = vpop.eup %2067  ;;  %v1210_v28 = vadd.f32 1.0, %v2066_v13 }
 0x2f2   : > { %v2070_v24 = vpop.eup %2069  ;;  %v1213_v40 = vadd.f32 1.0, %v2068_v15 }
 0x2f3   : > { %v2072_v43 = vpop.eup %2071  ;;  %v1208_v29 = vadd.f32 1.0, %v2070_v24 }
 0x2f4   : > { %2079 = vrcp.f32 %v1213_v40  ;;  %v1214_v45 = vadd.f32 1.0, %v2072_v43 }
 0x2f5   : > { %v2074_v47 = vpop.eup %2073  ;;  %2081 = vrcp.f32 %v1212_v27 }
 0x2f6   : > { %2083 = vrcp.f32 %v1214_v45  ;;  %v1215_v61 = vadd.f32 1.0, %v2074_v47 }
 0x2f7   : > { %2085 = vrcp.f32 %v1210_v28 }
 0x2f8   : > { %2087 = vrcp.f32 %v1215_v61 }
 0x2f9   : > { %2089 = vrcp.f32 %v1208_v29  ;;  %v2076_v33 = vpop.eup %2075 }
 0x2fa   : > { %v1233_v37 = vadd.f32 1.0, %v2076_v33 }
 0x2fc   : > { %v1241_v5 = vmul.f32 %v1233_v37, %v2400_v25 }
 0x2fd   : > { %v2078_v30 = vpop.eup %2077 }
 0x2fe   : > { %v1235_v44 = vadd.f32 1.0, %v2078_v30 }
 0x300   : > { %v1243_v63 = vmul.f32 %v1235_v44, %v2384_v17  ;;  %v1928_v17 = vld [vmem:[%s2578_s11] sm:$0xff]  }
 0x301   : > { %v2080_v32 = vpop.eup %2079 }
 0x302   : > { %v2082_v34 = vpop.eup %2081  ;;  %v1237_v42 = vadd.f32 1.0, %v2080_v32  ;;  %v1414_v16 = vpack.c.bf16 %v1243_v63, %v1241_v5 }
 0x303   : > { %v2084_v35 = vpop.eup %2083  ;;  %v1236_v48 = vadd.f32 1.0, %v2082_v34 }
 0x304   : > { %v2086_v38 = vpop.eup %2085  ;;  %v1238_v39 = vadd.f32 1.0, %v2084_v35  ;;  %v1245_v58 = vmul.f32 %v1237_v42, %v2387_v18 }
 0x305   : > { %v2088_v46 = vpop.eup %2087  ;;  %v1234_v54 = vadd.f32 1.0, %v2086_v38  ;;  %v1244_v2 = vmul.f32 %v1236_v48, %v2395_v23  ;;  %v1475_v23 = vpop.f32.mrf.mxu0 }
 0x306   : > { %v2090_v49 = vpop.eup %2089  ;;  %v1239_v51 = vadd.f32 1.0, %v2088_v46  ;;  %v1246_v57 = vmul.f32 %v1238_v39, %v2381_v14 }
 0x307   : > { %v1232_v1 = vadd.f32 1.0, %v2090_v49  ;;  %v1242_v10 = vmul.f32 %v1234_v54, %v2407_v53  ;;  %v1477_v25 = vpop.f32.mrf.mxu0 }
 0x308   : > { %v1247_v60 = vmul.f32 %v1239_v51, %v2391_v20  ;;  %v1415_v8 = vpack.c.bf16 %v1246_v57, %v1244_v2  ;;  %v1930_v20 = vld [vmem:[%s2578_s11 + $0x8] sm:$0xff]  }
 0x309   : > { %v1240_v14 = vmul.f32 %v1232_v1, %v2415_v59  ;;  %v1479_v53 = vpop.f32.mrf.mxu0 }
 0x30a   : > { %v1416_v4 = vpack.c.bf16 %v1247_v60, %v1245_v58 }
 0x30b   : > { %v1413_v18 = vpack.c.bf16 %v1242_v10, %v1240_v14  ;;  %v1481_v59 = vpop.f32.mrf.mxu0 }
 0x30c   : > { %1522 = vmatprep.subr.bf16.mxu1 %v1416_v4 }
 0x30d   : > { %1523 = vmatpush1.bf16.msra.mxu1 %v1415_v8  ;;  %v1485_v9 = vpop.f32.mrf.mxu0 }
 0x30e   : > { %1524 = vmatprep.subr.bf16.mxu1 %v1414_v16 }
 0x30f   : > { %v1487_v31 = vpop.f32.mrf.mxu0 }
 0x311   : > { %1525 = vmatpush1.bf16.msra.mxu1 %v1413_v18  ;;  %v1489_v40 = vpop.f32.mrf.mxu0 }
 0x313   : > { %v1491_v32 = vpop.f32.mrf.mxu0 }
 0x314   : > { %1867 = vmatmul.mubr.msk.bf16.vlgmr.msra.gmra.mxu1 %vm866_vm2, %v1928_v17 }
 0x315   : > { %1552 = vmatprep.mubr.bf16.mxu1 %v2147_v0  ;;  %v1575_v0 = vpop.permute.xlu1 %1574 }
 0x319   : > { %v1585_v29 = vpop.permute.xlu1 %1584 }
 0x31c   : > { %1868 = vmatmul.mubr.msk.bf16.gmra.mxu1 %vm866_vm2, %v1930_v20 }
 0x3d4   : > { %v1544_v19 = vpop.f32.mrf.mxu1 }
 0x3d5   : > { %v1545_v6 = vadd.f32 %v1544_v19, %v1475_v23 }
 0x3d6   : > { %v1546_v50 = vpop.f32.mrf.mxu1 }
 0x3d7   : > { %v2542_v36 = vadd.f32 %v1570_v22, %v1545_v6  ;;  %v1547_v26 = vadd.f32 %v1546_v50, %v1477_v25 }
 0x3d8   : > { %v1548_v7 = vpop.f32.mrf.mxu1 }
 0x3d9   : > { %v1869_v12 = vmul.f32 -1.442695, %v2542_v36  ;;  %v2545_v62 = vadd.f32 %v1570_v22, %v1547_v26  ;;  %v1549_v11 = vadd.f32 %v1548_v7, %v1479_v53 }
 0x3da   : > { %v1550_v56 = vpop.f32.mrf.mxu1 }
 0x3db   : > { %2091 = vpow2.f32 %v1869_v12  ;;  %v1870_v21 = vmul.f32 -1.442695, %v2545_v62  ;;  %v2548_v52 = vadd.f32 %v1575_v0, %v1549_v11  ;;  %v1551_v55 = vadd.f32 %v1550_v56, %v1481_v59 }
 0x3dc   : > { %v1554_v41 = vpop.f32.mrf.mxu1 }
 0x3dd   : > { %2093 = vpow2.f32 %v1870_v21  ;;  %v1871_v13 = vmul.f32 -1.442695, %v2548_v52  ;;  %v1590_v15 = vadd.f32 %v1575_v0, %v1551_v55  ;;  %v1555_v27 = vadd.f32 %v1554_v41, %v1485_v9 }
 0x3de   : > { %v1556_v24 = vpop.f32.mrf.mxu1 }
 0x3df   : > { %2095 = vpow2.f32 %v1871_v13  ;;  %v1872_v43 = vmul.f32 -1.442695, %v1590_v15  ;;  %v1591_v28 = vadd.f32 %v1580_v3, %v1555_v27  ;;  %v1557_v45 = vadd.f32 %v1556_v24, %v1487_v31 }
 0x3e0   : > { %v1558_v47 = vpop.f32.mrf.mxu1 }
 0x3e1   : > { %2097 = vpow2.f32 %v1872_v43  ;;  %v1873_v61 = vmul.f32 -1.442695, %v1591_v28  ;;  %v1592_v33 = vadd.f32 %v1580_v3, %v1557_v45  ;;  %v1559_v30 = vadd.f32 %v1558_v47, %v1489_v40 }
 0x3e2   : > { %v1560_v34 = vpop.f32.mrf.mxu1 }
 0x3e3   : > { %2099 = vpow2.f32 %v1873_v61  ;;  %v1874_v35 = vmul.f32 -1.442695, %v1592_v33  ;;  %v1593_v38 = vadd.f32 %v1585_v29, %v1559_v30  ;;  %v1561_v39 = vadd.f32 %v1560_v34, %v1491_v32 }
 0x3e5   : > { %2101 = vpow2.f32 %v1874_v35  ;;  %v1875_v42 = vmul.f32 -1.442695, %v1593_v38  ;;  %v1594_v44 = vadd.f32 %v1585_v29, %v1561_v39 }
 0x3e7   : > { %2103 = vpow2.f32 %v1875_v42  ;;  %v1876_v46 = vmul.f32 -1.442695, %v1594_v44 }
 0x3e8   : > { %v2092_v48 = vpop.eup %2091 }
 0x3e9   : > { %v1619_v49 = vadd.f32 1.0, %v2092_v48  ;;  %2105 = vpow2.f32 %v1876_v46 }
 0x3ea   : > { %v2094_v51 = vpop.eup %2093 }
 0x3eb   : > { %2107 = vrcp.f32 %v1619_v49  ;;  %v1620_v37 = vadd.f32 1.0, %v2094_v51 }
 0x3ec   : > { %v2096_v54 = vpop.eup %2095 }
 0x3ed   : > { %2109 = vrcp.f32 %v1620_v37  ;;  %v1621_v57 = vadd.f32 1.0, %v2096_v54 }
 0x3ee   : > { %v2098_v58 = vpop.eup %2097 }
 0x3ef   : > { %2111 = vrcp.f32 %v1621_v57  ;;  %v1622_v60 = vadd.f32 1.0, %v2098_v58 }
 0x3f0   : > { %v2100_v63 = vpop.eup %2099 }
 0x3f1   : > { %2113 = vrcp.f32 %v1622_v60  ;;  %v1623_v1 = vadd.f32 1.0, %v2100_v63 }
 0x3f2   : > { %v2102_v2 = vpop.eup %2101 }
 0x3f3   : > { %2115 = vrcp.f32 %v1623_v1  ;;  %v1624_v4 = vadd.f32 1.0, %v2102_v2 }
 0x3f4   : > { %v2104_v5 = vpop.eup %2103 }
 0x3f5   : > { %2117 = vrcp.f32 %v1624_v4  ;;  %v1625_v8 = vadd.f32 1.0, %v2104_v5 }
 0x3f6   : > { %v2106_v10 = vpop.eup %2105 }
 0x3f7   : > { %2119 = vrcp.f32 %v1625_v8  ;;  %v1626_v16 = vadd.f32 1.0, %v2106_v10 }
 0x3f8   : > { %v2108_v14 = vpop.eup %2107 }
 0x3f9   : > { %2121 = vrcp.f32 %v1626_v16  ;;  %v1643_v17 = vmul.f32 %v2108_v14, %v2542_v36 }
 0x3fa   : > { %v2110_v18 = vpop.eup %2109 }
 0x3fb   : > { %v1644_v20 = vmul.f32 %v2110_v18, %v2545_v62 }
 0x3fc   : > { %v2112_v23 = vpop.eup %2111 }
 0x3fd   : > { %v1886_v25 = vpack.c.bf16 %v1644_v20, %v1643_v17  ;;  %v1645_v59 = vmul.f32 %v2112_v23, %v2548_v52 }
 0x3fe   : > { %v2114_v53 = vpop.eup %2113 }
 0x3ff   : > { %1675 = vst [vmem:[%s541_s24] sm:$0xff] %v1886_v25  ;;  %v1646_v19 = vmul.f32 %v2114_v53, %v1590_v15 }
 0x400   : > { %v2116_v22 = vpop.eup %2115 }
 0x401   : > { %v1887_v6 = vpack.c.bf16 %v1646_v19, %v1645_v59  ;;  %v1647_v9 = vmul.f32 %v2116_v22, %v1591_v28 }
 0x402   : > { %v2118_v50 = vpop.eup %2117 }
 0x403   : > { %1676 = vst [vmem:[%s541_s24 + $0x8] sm:$0xff] %v1887_v6  ;;  %v1648_v26 = vmul.f32 %v2118_v50, %v1592_v33 }
 0x404   : > { %v2120_v36 = vpop.eup %2119 }
 0x405   : > { %v1888_v7 = vpack.c.bf16 %v1648_v26, %v1647_v9  ;;  %v1649_v12 = vmul.f32 %v2120_v36, %v1593_v38 }
 0x406   : > { %v2122_v0 = vpop.eup %2121 }
 0x407   : > { %1677 = vst [vmem:[%s541_s24 + $0x10] sm:$0xff] %v1888_v7  ;;  %v1650_v62 = vmul.f32 %v2122_v0, %v1594_v44 }
 0x409   : > { %v1889_v11 = vpack.c.bf16 %v1650_v62, %v1649_v12 }
 0x40b   : > { %1678 = vst [vmem:[%s541_s24 + $0x18] sm:$0xff] %v1889_v11 }
 0x40c PF: > { %s24_s15 = sadd.s32 1, %s2145_s15   ;;  %s2582_s29 = smov %s2141_s30 }
 0x40d   : > { %p21_p5 = scmp.ge.s32.totalorder %s24_s15, 4   ;;  %s2583_s30 = smov %s2585_s16 }
 0x40f   :  { %23 = sbr.rel (!%p21_p5) target bundleno = 2 (0x2), region = 109 }

</bundles_post_ra>
